<compile_context>
chip_gen: v6e
topology: v6e:2x2x1
jax: 0.10.0
libtpu: 0.0.40
codegen_flags: <defaults>
</compile_context>

<pallas_src>
import functools

import jax
import jax.numpy as jnp
from jax.experimental import pallas as pl
from jax.experimental.pallas import tpu as pltpu


def layercake_kernel(x_ref,
                     w1_ref, b1_ref,
                     w2_ref, b2_ref,
                     w3_ref, b3_ref,
                     w4_ref, b4_ref,
                     w5_ref, b5_ref,
                     w6_ref, b6_ref,
                     o_ref):
    """Fused 6-layer MLP.  x/weights are bf16, accumulation + bias + ReLU in f32."""

    def linear(h_bf16, w_ref, b_ref):
        # bf16 x bf16 -> f32 accumulate on the MXU, then one f32 bias add (VPU).
        return (jnp.dot(h_bf16, w_ref[...], preferred_element_type=jnp.float32)
                + b_ref[...])

    def relu_bf16(h_f32):
        return jnp.maximum(h_f32, 0.0).astype(jnp.bfloat16)

    h = x_ref[...]                                   # bf16 (block_b, 128k)
    h = relu_bf16(linear(h, w1_ref, b1_ref))
    h = relu_bf16(linear(h, w2_ref, b2_ref))
    h = relu_bf16(linear(h, w3_ref, b3_ref))
    h = relu_bf16(linear(h, w4_ref, b4_ref))
    h = relu_bf16(linear(h, w5_ref, b5_ref))
    y = linear(h, w6_ref, b6_ref)                    # final layer: no ReLU
    o_ref[...] = y.astype(o_ref.dtype)


def _round_up(x, m):
    return ((x + m - 1) // m) * m


@functools.partial(jax.jit, static_argnames=("block_b",))
def layercake(x, params, *, block_b=256):
    """x: (B, D_in) f32.  params: list of 6 (w, b) with w:(in, out), b:(1, out)."""
    B, D_in = x.shape
    D_out = params[-1][0].shape[1]

    # ---- lane-pad every feature dim to a multiple of 128 (lane-dense layout) ----
    dims = [D_in] + [w.shape[1] for (w, _) in params]
    pdims = [_round_up(d, 128) for d in dims]

    flat_params = []
    weight_bytes = 0
    for li, (w, b) in enumerate(params):
        kin, kout = w.shape
        wp = jnp.pad(w.astype(jnp.bfloat16),
                     ((0, pdims[li] - kin), (0, pdims[li + 1] - kout)))
        bp = jnp.pad(b.astype(jnp.float32), ((0, 0), (0, pdims[li + 1] - kout)))
        flat_params.extend([wp, bp])
        weight_bytes += wp.size * 2 + bp.size * 4

    # ---- batch tile: large (amortize grid-step cost, fill MXU M), multiple of 8,
    #      but keep grid length >= 2 so v7x's two TensorCores both get work. ------
    eff_b = max(8, min(block_b, _round_up(pl.cdiv(B, 2), 8)))
    Bp = _round_up(B, eff_b)

    xp = jnp.pad(x, ((0, Bp - B), (0, pdims[0] - D_in))).astype(jnp.bfloat16)

    # ---- BlockSpecs: x/out tiled along batch; weights/biases full-array resident.
    in_specs = [pl.BlockSpec((eff_b, pdims[0]), lambda i: (i, 0))]
    for p in flat_params:
        in_specs.append(pl.BlockSpec(p.shape, lambda i: (0, 0)))
    out_spec = pl.BlockSpec((eff_b, pdims[-1]), lambda i: (i, 0))

    flops = 2 * Bp * sum(pdims[i] * pdims[i + 1] for i in range(6))
    bytes_accessed = xp.size * 2 + weight_bytes + Bp * pdims[-1] * 4
    cost = pl.CostEstimate(flops=flops, transcendentals=0,
                           bytes_accessed=bytes_accessed)

    out = pl.pallas_call(
        layercake_kernel,
        out_shape=jax.ShapeDtypeStruct((Bp, pdims[-1]), jnp.float32),
        grid_spec=pltpu.PrefetchScalarGridSpec(
            num_scalar_prefetch=0,
            grid=(Bp // eff_b,),
            in_specs=in_specs,
            out_specs=out_spec,
        ),
        compiler_params=pltpu.CompilerParams(
            dimension_semantics=("parallel",)),
        cost_estimate=cost,
    )(xp, *flat_params)

    # Slice padded batch rows and padded output lanes back off.
    return out[:B, :D_out]


def init_linear(key, fan_in, fan_out):
    """Deterministic init mimicking torch.nn.Linear (uniform +/- 1/sqrt(fan_in))."""
    kw, kb = jax.random.split(key)
    bound = 1.0 / jnp.sqrt(jnp.float32(fan_in))
    # Stored already transposed: (in, out).
    w = jax.random.uniform(kw, (fan_in, fan_out), jnp.float32, -bound, bound)
    b = jax.random.uniform(kb, (1, fan_out), jnp.float32, -bound, bound)
    return w, b


def layercake_ref(x, params):
    h = x
    for i, (w, b) in enumerate(params):
        h = h @ w + b
        if i < len(params) - 1:
            h = jnp.maximum(h, 0.0)
    return h


if __name__ == "__main__":
    # Small shapes consistent with the module: D_in, H1..H5, D_out.
    D_in, H1, H2, H3, H4, H5, D_out = 32, 64, 64, 32, 32, 16, 8
    B = 16

    key = jax.random.PRNGKey(0)
    keys = jax.random.split(key, 7)
    dims = [D_in, H1, H2, H3, H4, H5, D_out]
    params = [init_linear(keys[i], dims[i], dims[i + 1]) for i in range(6)]

    x = jax.random.normal(keys[6], (B, D_in), jnp.float32)

    y = layercake(x, params)
    y = jax.block_until_ready(y)

    y_ref = layercake_ref(x, params)
    assert y.shape == (B, D_out)
    # bf16 matmuls with f32 accumulation: loosened tolerance vs. the f32 reference.
    assert jnp.allclose(y, y_ref, atol=3e-2, rtol=3e-2), "mismatch vs reference"

    print("KERNEL_OK")
</pallas_src>

<mosaic_0001>
module attributes {stable_mosaic.version = 11 : i64} {
  func.func @layercake_kernel(%arg0: i32, %arg1: memref<8x128xbf16, #tpu.memory_space<vmem>>, %arg2: memref<128x128xbf16, #tpu.memory_space<vmem>>, %arg3: memref<1x128xf32, #tpu.memory_space<vmem>>, %arg4: memref<128x128xbf16, #tpu.memory_space<vmem>>, %arg5: memref<1x128xf32, #tpu.memory_space<vmem>>, %arg6: memref<128x128xbf16, #tpu.memory_space<vmem>>, %arg7: memref<1x128xf32, #tpu.memory_space<vmem>>, %arg8: memref<128x128xbf16, #tpu.memory_space<vmem>>, %arg9: memref<1x128xf32, #tpu.memory_space<vmem>>, %arg10: memref<128x128xbf16, #tpu.memory_space<vmem>>, %arg11: memref<1x128xf32, #tpu.memory_space<vmem>>, %arg12: memref<128x128xbf16, #tpu.memory_space<vmem>>, %arg13: memref<1x128xf32, #tpu.memory_space<vmem>>, %arg14: memref<8x128xf32, #tpu.memory_space<vmem>>) attributes {dimension_semantics = [#tpu.dimension_semantics<parallel>], iteration_bounds = array<i64: 2>, scalar_prefetch = 0 : i64, scratch_operands = 0 : i64, tpu.core_type = #tpu.core_type<tc>, window_params = [{transform_indices = @transform_0, window_bounds = array<i64: 8, 128>}, {pipeline_mode = #tpu.pipeline_mode<synchronous>, transform_indices = @transform_1, window_bounds = array<i64: 128, 128>}, {pipeline_mode = #tpu.pipeline_mode<synchronous>, transform_indices = @transform_2, window_bounds = array<i64: 1, 128>}, {pipeline_mode = #tpu.pipeline_mode<synchronous>, transform_indices = @transform_3, window_bounds = array<i64: 128, 128>}, {pipeline_mode = #tpu.pipeline_mode<synchronous>, transform_indices = @transform_4, window_bounds = array<i64: 1, 128>}, {pipeline_mode = #tpu.pipeline_mode<synchronous>, transform_indices = @transform_5, window_bounds = array<i64: 128, 128>}, {pipeline_mode = #tpu.pipeline_mode<synchronous>, transform_indices = @transform_6, window_bounds = array<i64: 1, 128>}, {pipeline_mode = #tpu.pipeline_mode<synchronous>, transform_indices = @transform_7, window_bounds = array<i64: 128, 128>}, {pipeline_mode = #tpu.pipeline_mode<synchronous>, transform_indices = @transform_8, window_bounds = array<i64: 1, 128>}, {pipeline_mode = #tpu.pipeline_mode<synchronous>, transform_indices = @transform_9, window_bounds = array<i64: 128, 128>}, {pipeline_mode = #tpu.pipeline_mode<synchronous>, transform_indices = @transform_10, window_bounds = array<i64: 1, 128>}, {pipeline_mode = #tpu.pipeline_mode<synchronous>, transform_indices = @transform_11, window_bounds = array<i64: 128, 128>}, {pipeline_mode = #tpu.pipeline_mode<synchronous>, transform_indices = @transform_12, window_bounds = array<i64: 1, 128>}, {transform_indices = @transform_13, window_bounds = array<i64: 8, 128>}]} {
    %c0 = arith.constant 0 : index
    %c0_0 = arith.constant 0 : index
    %0 = vector.load %arg1[%c0, %c0_0] : memref<8x128xbf16, #tpu.memory_space<vmem>>, vector<8x128xbf16>
    %c0_1 = arith.constant 0 : index
    %c0_2 = arith.constant 0 : index
    %1 = vector.load %arg2[%c0_1, %c0_2] : memref<128x128xbf16, #tpu.memory_space<vmem>>, vector<128x128xbf16>
    %cst = arith.constant dense<0.000000e+00> : vector<8x128xf32>
    %2 = tpu.matmul %0, %1, %cst {dimension_numbers = #tpu.dot_dimension_numbers<[1], [0], [0], [1], [0, 0, 1, 1], [], []>} : vector<8x128xbf16>, vector<128x128xbf16>, vector<8x128xf32> -> vector<8x128xf32>
    %c0_3 = arith.constant 0 : index
    %c0_4 = arith.constant 0 : index
    %3 = vector.load %arg3[%c0_3, %c0_4] : memref<1x128xf32, #tpu.memory_space<vmem>>, vector<1x128xf32>
    %4 = vector.broadcast %3 : vector<1x128xf32> to vector<8x128xf32>
    %5 = arith.addf %2, %4 : vector<8x128xf32>
    %cst_5 = arith.constant 0.000000e+00 : f32
    %6 = vector.broadcast %cst_5 : f32 to vector<8x128xf32>
    %7 = arith.maximumf %5, %6 : vector<8x128xf32>
    %8 = arith.truncf %7 : vector<8x128xf32> to vector<8x128xbf16>
    %c0_6 = arith.constant 0 : index
    %c0_7 = arith.constant 0 : index
    %9 = vector.load %arg4[%c0_6, %c0_7] : memref<128x128xbf16, #tpu.memory_space<vmem>>, vector<128x128xbf16>
    %cst_8 = arith.constant dense<0.000000e+00> : vector<8x128xf32>
    %10 = tpu.matmul %8, %9, %cst_8 {dimension_numbers = #tpu.dot_dimension_numbers<[1], [0], [0], [1], [0, 0, 1, 1], [], []>} : vector<8x128xbf16>, vector<128x128xbf16>, vector<8x128xf32> -> vector<8x128xf32>
    %c0_9 = arith.constant 0 : index
    %c0_10 = arith.constant 0 : index
    %11 = vector.load %arg5[%c0_9, %c0_10] : memref<1x128xf32, #tpu.memory_space<vmem>>, vector<1x128xf32>
    %12 = vector.broadcast %11 : vector<1x128xf32> to vector<8x128xf32>
    %13 = arith.addf %10, %12 : vector<8x128xf32>
    %cst_11 = arith.constant 0.000000e+00 : f32
    %14 = vector.broadcast %cst_11 : f32 to vector<8x128xf32>
    %15 = arith.maximumf %13, %14 : vector<8x128xf32>
    %16 = arith.truncf %15 : vector<8x128xf32> to vector<8x128xbf16>
    %c0_12 = arith.constant 0 : index
    %c0_13 = arith.constant 0 : index
    %17 = vector.load %arg6[%c0_12, %c0_13] : memref<128x128xbf16, #tpu.memory_space<vmem>>, vector<128x128xbf16>
    %cst_14 = arith.constant dense<0.000000e+00> : vector<8x128xf32>
    %18 = tpu.matmul %16, %17, %cst_14 {dimension_numbers = #tpu.dot_dimension_numbers<[1], [0], [0], [1], [0, 0, 1, 1], [], []>} : vector<8x128xbf16>, vector<128x128xbf16>, vector<8x128xf32> -> vector<8x128xf32>
    %c0_15 = arith.constant 0 : index
    %c0_16 = arith.constant 0 : index
    %19 = vector.load %arg7[%c0_15, %c0_16] : memref<1x128xf32, #tpu.memory_space<vmem>>, vector<1x128xf32>
    %20 = vector.broadcast %19 : vector<1x128xf32> to vector<8x128xf32>
    %21 = arith.addf %18, %20 : vector<8x128xf32>
    %cst_17 = arith.constant 0.000000e+00 : f32
    %22 = vector.broadcast %cst_17 : f32 to vector<8x128xf32>
    %23 = arith.maximumf %21, %22 : vector<8x128xf32>
    %24 = arith.truncf %23 : vector<8x128xf32> to vector<8x128xbf16>
    %c0_18 = arith.constant 0 : index
    %c0_19 = arith.constant 0 : index
    %25 = vector.load %arg8[%c0_18, %c0_19] : memref<128x128xbf16, #tpu.memory_space<vmem>>, vector<128x128xbf16>
    %cst_20 = arith.constant dense<0.000000e+00> : vector<8x128xf32>
    %26 = tpu.matmul %24, %25, %cst_20 {dimension_numbers = #tpu.dot_dimension_numbers<[1], [0], [0], [1], [0, 0, 1, 1], [], []>} : vector<8x128xbf16>, vector<128x128xbf16>, vector<8x128xf32> -> vector<8x128xf32>
    %c0_21 = arith.constant 0 : index
    %c0_22 = arith.constant 0 : index
    %27 = vector.load %arg9[%c0_21, %c0_22] : memref<1x128xf32, #tpu.memory_space<vmem>>, vector<1x128xf32>
    %28 = vector.broadcast %27 : vector<1x128xf32> to vector<8x128xf32>
    %29 = arith.addf %26, %28 : vector<8x128xf32>
    %cst_23 = arith.constant 0.000000e+00 : f32
    %30 = vector.broadcast %cst_23 : f32 to vector<8x128xf32>
    %31 = arith.maximumf %29, %30 : vector<8x128xf32>
    %32 = arith.truncf %31 : vector<8x128xf32> to vector<8x128xbf16>
    %c0_24 = arith.constant 0 : index
    %c0_25 = arith.constant 0 : index
    %33 = vector.load %arg10[%c0_24, %c0_25] : memref<128x128xbf16, #tpu.memory_space<vmem>>, vector<128x128xbf16>
    %cst_26 = arith.constant dense<0.000000e+00> : vector<8x128xf32>
    %34 = tpu.matmul %32, %33, %cst_26 {dimension_numbers = #tpu.dot_dimension_numbers<[1], [0], [0], [1], [0, 0, 1, 1], [], []>} : vector<8x128xbf16>, vector<128x128xbf16>, vector<8x128xf32> -> vector<8x128xf32>
    %c0_27 = arith.constant 0 : index
    %c0_28 = arith.constant 0 : index
    %35 = vector.load %arg11[%c0_27, %c0_28] : memref<1x128xf32, #tpu.memory_space<vmem>>, vector<1x128xf32>
    %36 = vector.broadcast %35 : vector<1x128xf32> to vector<8x128xf32>
    %37 = arith.addf %34, %36 : vector<8x128xf32>
    %cst_29 = arith.constant 0.000000e+00 : f32
    %38 = vector.broadcast %cst_29 : f32 to vector<8x128xf32>
    %39 = arith.maximumf %37, %38 : vector<8x128xf32>
    %40 = arith.truncf %39 : vector<8x128xf32> to vector<8x128xbf16>
    %c0_30 = arith.constant 0 : index
    %c0_31 = arith.constant 0 : index
    %41 = vector.load %arg12[%c0_30, %c0_31] : memref<128x128xbf16, #tpu.memory_space<vmem>>, vector<128x128xbf16>
    %cst_32 = arith.constant dense<0.000000e+00> : vector<8x128xf32>
    %42 = tpu.matmul %40, %41, %cst_32 {dimension_numbers = #tpu.dot_dimension_numbers<[1], [0], [0], [1], [0, 0, 1, 1], [], []>} : vector<8x128xbf16>, vector<128x128xbf16>, vector<8x128xf32> -> vector<8x128xf32>
    %c0_33 = arith.constant 0 : index
    %c0_34 = arith.constant 0 : index
    %43 = vector.load %arg13[%c0_33, %c0_34] : memref<1x128xf32, #tpu.memory_space<vmem>>, vector<1x128xf32>
    %44 = vector.broadcast %43 : vector<1x128xf32> to vector<8x128xf32>
    %45 = arith.addf %42, %44 : vector<8x128xf32>
    %c0_35 = arith.constant 0 : index
    %c0_36 = arith.constant 0 : index
    %46 = vector.load %arg14[%c0_35, %c0_36] : memref<8x128xf32, #tpu.memory_space<vmem>>, vector<8x128xf32>
    tpu.vector_store %arg14[%c0_35, %c0_36], %45 {strides = array<i32>} : memref<8x128xf32, #tpu.memory_space<vmem>>, vector<8x128xf32>,
    return
  }
  func.func @transform_0(%arg0: i32) -> (i32, i32) {
    %c0_i32 = arith.constant 0 : i32
    %c0_i32_0 = arith.constant 0 : i32
    return %arg0, %c0_i32 : i32, i32
  }
  func.func @transform_1(%arg0: i32) -> (i32, i32) {
    %c0_i32 = arith.constant 0 : i32
    %c0_i32_0 = arith.constant 0 : i32
    %c0_i32_1 = arith.constant 0 : i32
    return %c0_i32, %c0_i32_0 : i32, i32
  }
  func.func @transform_2(%arg0: i32) -> (i32, i32) {
    %c0_i32 = arith.constant 0 : i32
    %c0_i32_0 = arith.constant 0 : i32
    %c0_i32_1 = arith.constant 0 : i32
    return %c0_i32, %c0_i32_0 : i32, i32
  }
  func.func @transform_3(%arg0: i32) -> (i32, i32) {
    %c0_i32 = arith.constant 0 : i32
    %c0_i32_0 = arith.constant 0 : i32
    %c0_i32_1 = arith.constant 0 : i32
    return %c0_i32, %c0_i32_0 : i32, i32
  }
  func.func @transform_4(%arg0: i32) -> (i32, i32) {
    %c0_i32 = arith.constant 0 : i32
    %c0_i32_0 = arith.constant 0 : i32
    %c0_i32_1 = arith.constant 0 : i32
    return %c0_i32, %c0_i32_0 : i32, i32
  }
  func.func @transform_5(%arg0: i32) -> (i32, i32) {
    %c0_i32 = arith.constant 0 : i32
    %c0_i32_0 = arith.constant 0 : i32
    %c0_i32_1 = arith.constant 0 : i32
    return %c0_i32, %c0_i32_0 : i32, i32
  }
  func.func @transform_6(%arg0: i32) -> (i32, i32) {
    %c0_i32 = arith.constant 0 : i32
    %c0_i32_0 = arith.constant 0 : i32
    %c0_i32_1 = arith.constant 0 : i32
    return %c0_i32, %c0_i32_0 : i32, i32
  }
  func.func @transform_7(%arg0: i32) -> (i32, i32) {
    %c0_i32 = arith.constant 0 : i32
    %c0_i32_0 = arith.constant 0 : i32
    %c0_i32_1 = arith.constant 0 : i32
    return %c0_i32, %c0_i32_0 : i32, i32
  }
  func.func @transform_8(%arg0: i32) -> (i32, i32) {
    %c0_i32 = arith.constant 0 : i32
    %c0_i32_0 = arith.constant 0 : i32
    %c0_i32_1 = arith.constant 0 : i32
    return %c0_i32, %c0_i32_0 : i32, i32
  }
  func.func @transform_9(%arg0: i32) -> (i32, i32) {
    %c0_i32 = arith.constant 0 : i32
    %c0_i32_0 = arith.constant 0 : i32
    %c0_i32_1 = arith.constant 0 : i32
    return %c0_i32, %c0_i32_0 : i32, i32
  }
  func.func @transform_10(%arg0: i32) -> (i32, i32) {
    %c0_i32 = arith.constant 0 : i32
    %c0_i32_0 = arith.constant 0 : i32
    %c0_i32_1 = arith.constant 0 : i32
    return %c0_i32, %c0_i32_0 : i32, i32
  }
  func.func @transform_11(%arg0: i32) -> (i32, i32) {
    %c0_i32 = arith.constant 0 : i32
    %c0_i32_0 = arith.constant 0 : i32
    %c0_i32_1 = arith.constant 0 : i32
    return %c0_i32, %c0_i32_0 : i32, i32
  }
  func.func @transform_12(%arg0: i32) -> (i32, i32) {
    %c0_i32 = arith.constant 0 : i32
    %c0_i32_0 = arith.constant 0 : i32
    %c0_i32_1 = arith.constant 0 : i32
    return %c0_i32, %c0_i32_0 : i32, i32
  }
  func.func @transform_13(%arg0: i32) -> (i32, i32) {
    %c0_i32 = arith.constant 0 : i32
    %c0_i32_0 = arith.constant 0 : i32
    return %arg0, %c0_i32 : i32, i32
  }
}

</mosaic_0001>

<bundles_post_ra>
// kernel: layercake.1
= control target key start
LH: loop header
LB: loop body
LE: loop exit
PB: predicated region body
PF: predicated region fallthrough
CT: control target
= control target key end

     0   :  { %s1543_s25 = smov 0   ;;  %s1786_s0 = inlined_call_operand.vmem [shape: bf16[16,128], index: 0, kind: input, shape index: {}]   ;;  %s1787_s1 = inlined_call_operand.vmem [shape: bf16[128,128], index: 1, kind: input, shape index: {}]   ;;  %s1788_s2 = inlined_call_operand.vmem [shape: f32[1,128], index: 2, kind: input, shape index: {}]   ;;  %s1789_s3 = inlined_call_operand.vmem [shape: bf16[128,128], index: 3, kind: input, shape index: {}]   ;;  %s1790_s4 = inlined_call_operand.vmem [shape: f32[1,128], index: 4, kind: input, shape index: {}]   ;;  %s1791_s5 = inlined_call_operand.vmem [shape: bf16[128,128], index: 5, kind: input, shape index: {}]   ;;  %s1792_s6 = inlined_call_operand.vmem [shape: f32[1,128], index: 6, kind: input, shape index: {}]   ;;  %s1793_s7 = inlined_call_operand.vmem [shape: bf16[128,128], index: 7, kind: input, shape index: {}]   ;;  %s1794_s8 = inlined_call_operand.vmem [shape: f32[1,128], index: 8, kind: input, shape index: {}]   ;;  %s1795_s9 = inlined_call_operand.vmem [shape: bf16[128,128], index: 9, kind: input, shape index: {}]   ;;  %s1796_s10 = inlined_call_operand.vmem [shape: f32[1,128], index: 10, kind: input, shape index: {}]   ;;  %s1797_s11 = inlined_call_operand.vmem [shape: bf16[128,128], index: 11, kind: input, shape index: {}]   ;;  %s1798_s12 = inlined_call_operand.vmem [shape: f32[1,128], index: 12, kind: input, shape index: {}]   ;;  %s1799_s13 = inlined_call_operand.vmem [shape: f32[16,128], index: 13, kind: output, shape index: {}]  }
   0x1 LB: > { %s1168_s26 = sadd.s32 4294967295, %s1469_s25   ;;  %p1172_p0 = scmp.ge.s32.totalorder %s1469_s25, 1  ;;  %s1469_s25 = sphi %s1543_s25, %s23_s25  }
   0x2   : > { %p386_p1 = scmp.lt.s32.totalorder %s1469_s25, 3 }
   0x4   : > { %p387_p2 = pnand %p1172_p0, %p386_p1 }
   0x5   : > { %p428_p3 = scmp.lt.s32.totalorder (!%p387_p2), %s1168_s26, 1 }
   0x6   : > { %390 = sbr.rel (%p387_p2) target bundleno = 1238 (0x4d6), region = 72 }
   0xb   : > { %v1415_v0 = vld [vmem:[%s1787_s1 + $0x38] sm:$0xff]   ;;  %v1471_v1 = vmov 0.0   ;;  %v1416_v2 = vld [vmem:[%s1787_s1 + $0x30] sm:$0xff]   ;;  %vm1472_vm0 = vmmov 0   ;;  %v1417_v3 = vld [vmem:[%s1787_s1 + $0x28] sm:$0xff]   ;;  %s1801_s26 = smov (!%p428_p3, %s1168_s26), 1 }
   0xc   : > { %1285 = vmatprep.subr.bf16.mxu0 %v1471_v1  ;;  %1305 = vmatprep.subr.bf16.mxu1 %v1471_v1  ;;  %v1423_v4 = vld [vmem:[%s1789_s3 + $0x38] sm:$0xff]   ;;  %v1418_v5 = vld [vmem:[%s1787_s1 + $0x20] sm:$0xff]   ;;  %v1424_v6 = vld [vmem:[%s1789_s3 + $0x30] sm:$0xff]   ;;  %s1173_s24 = sshll.u32 %s1801_s26, 2  ;;  %s1174_s15 = sshll.u32 %s1801_s26, 3 }
   0xd   : > { %1286 = vmatpush3.bf16.msra.mxu0 %v1415_v0  ;;  %1301 = vmatprep.mubr.msk.bf16.mxu0 %vm1472_vm0, %v1471_v1  ;;  %v1419_v7 = vld [vmem:[%s1787_s1 + $0x18] sm:$0xff]   ;;  %v1425_v8 = vld [vmem:[%s1789_s3 + $0x28] sm:$0xff]   ;;  %v1420_v9 = vld [vmem:[%s1787_s1 + $0x10] sm:$0xff]   ;;  %s431_s27 = scalar_lea.vmem %s1786_s0, %s1173_s24  ;;  %s435_s20 = scalar_lea.vmem %s1799_s13, %s1174_s15 }
   0xe   : > { %1287 = vmatprep.subr.bf16.mxu0 %v1471_v1  ;;  %1321 = vmatprep.mubr.msk.bf16.mxu1 %vm1472_vm0, %v1471_v1  ;;  %v1426_v10 = vld [vmem:[%s1789_s3 + $0x20] sm:$0xff]   ;;  %v1421_v11 = vld [vmem:[%s1787_s1 + $0x8] sm:$0xff]   ;;  %v1427_v12 = vld [vmem:[%s1789_s3 + $0x18] sm:$0xff]  }
   0xf   : > { %1306 = vmatpush3.bf16.msra.mxu1 %v1423_v4  ;;  %v1422_v13 = vld [vmem:[%s1787_s1] sm:$0xff]   ;;  %v1428_v14 = vld [vmem:[%s1789_s3 + $0x10] sm:$0xff]   ;;  %v1429_v16 = vld [vmem:[%s1789_s3 + $0x8] sm:$0xff]  }
  0x10   : > { %1307 = vmatprep.subr.bf16.mxu1 %v1471_v1  ;;  %v437_v15 = vld [vmem:[%s431_s27] sm:$0xf]  ;;  %v1431_v18 = vld [vmem:[%s1791_s5 + $0x38] sm:$0xff]   ;;  %v1432_v19 = vld [vmem:[%s1791_s5 + $0x30] sm:$0xff]  }
  0x11   : > { %1288 = vmatpush3.bf16.msra.mxu0 %v1416_v2  ;;  %v1430_v17 = vld [vmem:[%s1789_s3] sm:$0xff]   ;;  %v1433_v20 = vld [vmem:[%s1791_s5 + $0x28] sm:$0xff]   ;;  %v1435_v22 = vld [vmem:[%s1791_s5 + $0x18] sm:$0xff]  }
  0x12   : > { %1289 = vmatprep.subr.bf16.mxu0 %v1471_v1  ;;  %v1434_v21 = vld [vmem:[%s1791_s5 + $0x20] sm:$0xff]   ;;  %v1436_v23 = vld [vmem:[%s1791_s5 + $0x10] sm:$0xff]   ;;  %v1437_v32 = vld [vmem:[%s1791_s5 + $0x8] sm:$0xff]  }
  0x13   : > { %1308 = vmatpush3.bf16.msra.mxu1 %v1424_v6  ;;  %v1175_v24 = vld [vmem:[%s1788_s2] ss:$0 sm:$0xff]  ;;  %v1439_v34 = vld [vmem:[%s1793_s7 + $0x38] sm:$0xff]   ;;  %v1440_v35 = vld [vmem:[%s1793_s7 + $0x30] sm:$0xff]  }
  0x14   : > { %1309 = vmatprep.subr.bf16.mxu1 %v1471_v1  ;;  %v1438_v33 = vld [vmem:[%s1791_s5] sm:$0xff]   ;;  %v1441_v36 = vld [vmem:[%s1793_s7 + $0x28] sm:$0xff]   ;;  %v1443_v38 = vld [vmem:[%s1793_s7 + $0x18] sm:$0xff]  }
  0x15   : > { %1290 = vmatpush3.bf16.msra.mxu0 %v1417_v3  ;;  %v1442_v37 = vld [vmem:[%s1793_s7 + $0x20] sm:$0xff]   ;;  %v1444_v39 = vld [vmem:[%s1793_s7 + $0x10] sm:$0xff]   ;;  %v1445_v48 = vld [vmem:[%s1793_s7 + $0x8] sm:$0xff]  }
  0x16   : > { %1291 = vmatprep.subr.bf16.mxu0 %v1471_v1  ;;  %v1184_v40 = vld [vmem:[%s1790_s4] ss:$0 sm:$0xff]  ;;  %v1447_v50 = vld [vmem:[%s1795_s9 + $0x38] sm:$0xff]   ;;  %v1448_v51 = vld [vmem:[%s1795_s9 + $0x30] sm:$0xff]  }
  0x17   : > { %1310 = vmatpush3.bf16.msra.mxu1 %v1425_v8  ;;  %v1446_v49 = vld [vmem:[%s1793_s7] sm:$0xff]   ;;  %v1449_v52 = vld [vmem:[%s1795_s9 + $0x28] sm:$0xff]   ;;  %v1451_v54 = vld [vmem:[%s1795_s9 + $0x18] sm:$0xff]  }
  0x18   : > { %1311 = vmatprep.subr.bf16.mxu1 %v1471_v1  ;;  %v1450_v53 = vld [vmem:[%s1795_s9 + $0x20] sm:$0xff]   ;;  %v1452_v55 = vld [vmem:[%s1795_s9 + $0x10] sm:$0xff]   ;;  %v1453_v0 = vld [vmem:[%s1795_s9 + $0x8] sm:$0xff]  }
  0x19   : > { %1292 = vmatpush3.bf16.msra.mxu0 %v1418_v5  ;;  %v1193_v56 = vld [vmem:[%s1792_s6] ss:$0 sm:$0xff]  ;;  %v1455_v3 = vld [vmem:[%s1797_s11 + $0x38] sm:$0xff]   ;;  %v1456_v4 = vld [vmem:[%s1797_s11 + $0x30] sm:$0xff]  }
  0x1a   : > { %1293 = vmatprep.subr.bf16.mxu0 %v1471_v1  ;;  %v1454_v2 = vld [vmem:[%s1795_s9] sm:$0xff]   ;;  %v1457_v5 = vld [vmem:[%s1797_s11 + $0x28] sm:$0xff]   ;;  %v1460_v8 = vld [vmem:[%s1797_s11 + $0x10] sm:$0xff]  }
  0x1b   : > { %1312 = vmatpush3.bf16.msra.mxu1 %v1426_v10  ;;  %v1458_v6 = vld [vmem:[%s1797_s11 + $0x20] sm:$0xff]  }
  0x1c   : > { %1313 = vmatprep.subr.bf16.mxu1 %v1471_v1 }
  0x1d   : > { %1294 = vmatpush3.bf16.msra.mxu0 %v1419_v7  ;;  %v1459_v7 = vld [vmem:[%s1797_s11 + $0x18] sm:$0xff]  }
  0x1e   : > { %1295 = vmatprep.subr.bf16.mxu0 %v1471_v1 }
  0x1f   : > { %1314 = vmatpush3.bf16.msra.mxu1 %v1427_v12 }
  0x20   : > { %1315 = vmatprep.subr.bf16.mxu1 %v1471_v1 }
  0x21   : > { %1296 = vmatpush3.bf16.msra.mxu0 %v1420_v9  ;;  %v1202_v9 = vld [vmem:[%s1794_s8] ss:$0 sm:$0xff] }
  0x22   : > { %1297 = vmatprep.subr.bf16.mxu0 %v1471_v1 }
  0x23   : > { %1316 = vmatpush3.bf16.msra.mxu1 %v1428_v14 }
  0x24   : > { %1317 = vmatprep.subr.bf16.mxu1 %v1471_v1 }
  0x25   : > { %1298 = vmatpush3.bf16.msra.mxu0 %v1421_v11 }
  0x26   : > { %1299 = vmatprep.subr.bf16.mxu0 %v1471_v1 }
  0x27   : > { %1318 = vmatpush3.bf16.msra.mxu1 %v1429_v16 }
  0x28   : > { %1319 = vmatprep.subr.bf16.mxu1 %v1471_v1 }
  0x29   : > { %1300 = vmatpush3.bf16.msra.mxu0 %v1422_v13 }
  0x2a   : > { %1325 = vmatprep.subr.bf16.mxu0 %v1471_v1 }
  0x2b   : > { %1320 = vmatpush3.bf16.msra.mxu1 %v1430_v17  ;;  %v1461_v17 = vld [vmem:[%s1797_s11 + $0x8] sm:$0xff]  }
  0x2c   : > { %1302 = vmatmul.mubr.bf16.vlgmr.msra.gmra.mxu0 %v437_v15  ;;  %1345 = vmatprep.subr.bf16.mxu1 %v1471_v1 }
  0x2d   : > { %1341 = vmatprep.mubr.msk.bf16.mxu0 %vm1472_vm0, %v1471_v1  ;;  %1326 = vmatpush3.bf16.msra.mxu0 %v1431_v18  ;;  %v1462_v18 = vld [vmem:[%s1797_s11] sm:$0xff]  }
  0x2e   : > { %1327 = vmatprep.subr.bf16.mxu0 %v1471_v1 }
  0x31   : > { %1328 = vmatpush3.bf16.msra.mxu0 %v1432_v19  ;;  %v1211_v19 = vld [vmem:[%s1796_s10] ss:$0 sm:$0xff] }
  0x32   : > { %1329 = vmatprep.subr.bf16.mxu0 %v1471_v1 }
  0x35   : > { %1330 = vmatpush3.bf16.msra.mxu0 %v1433_v20 }
  0x36   : > { %1331 = vmatprep.subr.bf16.mxu0 %v1471_v1 }
  0x39   : > { %1332 = vmatpush3.bf16.msra.mxu0 %v1434_v21 }
  0x3a   : > { %1333 = vmatprep.subr.bf16.mxu0 %v1471_v1 }
  0x3d   : > { %1334 = vmatpush3.bf16.msra.mxu0 %v1435_v22 }
  0x3e   : > { %1335 = vmatprep.subr.bf16.mxu0 %v1471_v1 }
  0x41   : > { %1336 = vmatpush3.bf16.msra.mxu0 %v1436_v23 }
  0x42   : > { %1337 = vmatprep.subr.bf16.mxu0 %v1471_v1 }
  0x45   : > { %1338 = vmatpush3.bf16.msra.mxu0 %v1437_v32 }
  0x46   : > { %1339 = vmatprep.subr.bf16.mxu0 %v1471_v1 }
  0x49   : > { %1340 = vmatpush3.bf16.msra.mxu0 %v1438_v33 }
  0x4a   : > { %1365 = vmatprep.subr.bf16.mxu0 %v1471_v1 }
  0xec   : > { %v543_v25 = vpop.f32.mrf.mxu0 }
  0xed   : > { %v544_v26 = vadd.f32 %v1175_v24, %v543_v25 }
  0xee   : > { %v1303_v27 = vpop.f32.mrf.mxu0 }
  0xef   : > { %v549_v28 = vmax.f32 %v544_v26, 0.0 }
  0xf0   : > { %v546_v29 = vpop.f32.mrf.mxu0 }
  0xf1   : > { %v550_v30 = vpack.c.bf16 %v549_v28, %v549_v28 }
  0xf2   : > { %v1304_v31 = vpop.f32.mrf.mxu0 }
  0xf3   : > { %1322 = vmatmul.mubr.bf16.vlgmr.msra.gmra.mxu1 %v550_v30 }
  0xf4   : > { %1361 = vmatprep.mubr.msk.bf16.mxu1 %vm1472_vm0, %v1471_v1  ;;  %1346 = vmatpush3.bf16.msra.mxu1 %v1439_v34 }
  0xf5   : > { %1347 = vmatprep.subr.bf16.mxu1 %v1471_v1 }
  0xf8   : > { %1348 = vmatpush3.bf16.msra.mxu1 %v1440_v35 }
  0xf9   : > { %1349 = vmatprep.subr.bf16.mxu1 %v1471_v1 }
  0xfc   : > { %1350 = vmatpush3.bf16.msra.mxu1 %v1441_v36 }
  0xfd   : > { %1351 = vmatprep.subr.bf16.mxu1 %v1471_v1 }
 0x100   : > { %1352 = vmatpush3.bf16.msra.mxu1 %v1442_v37 }
 0x101   : > { %1353 = vmatprep.subr.bf16.mxu1 %v1471_v1 }
 0x104   : > { %1354 = vmatpush3.bf16.msra.mxu1 %v1443_v38 }
 0x105   : > { %1355 = vmatprep.subr.bf16.mxu1 %v1471_v1 }
 0x108   : > { %1356 = vmatpush3.bf16.msra.mxu1 %v1444_v39 }
 0x109   : > { %1357 = vmatprep.subr.bf16.mxu1 %v1471_v1 }
 0x10c   : > { %1358 = vmatpush3.bf16.msra.mxu1 %v1445_v48 }
 0x10d   : > { %1359 = vmatprep.subr.bf16.mxu1 %v1471_v1 }
 0x110   : > { %1360 = vmatpush3.bf16.msra.mxu1 %v1446_v49 }
 0x111   : > { %1385 = vmatprep.subr.bf16.mxu1 %v1471_v1 }
 0x1b3   : > { %v656_v41 = vpop.f32.mrf.mxu1 }
 0x1b4   : > { %v657_v42 = vadd.f32 %v1184_v40, %v656_v41 }
 0x1b5   : > { %v1323_v43 = vpop.f32.mrf.mxu1 }
 0x1b6   : > { %v662_v44 = vmax.f32 %v657_v42, 0.0 }
 0x1b7   : > { %v659_v45 = vpop.f32.mrf.mxu1 }
 0x1b8   : > { %v663_v46 = vpack.c.bf16 %v662_v44, %v662_v44 }
 0x1b9   : > { %v1324_v47 = vpop.f32.mrf.mxu1 }
 0x1ba   : > { %1342 = vmatmul.mubr.bf16.vlgmr.msra.gmra.mxu0 %v663_v46 }
 0x1bb   : > { %1381 = vmatprep.mubr.msk.bf16.mxu0 %vm1472_vm0, %v1471_v1  ;;  %1366 = vmatpush3.bf16.msra.mxu0 %v1447_v50 }
 0x1bc   : > { %1367 = vmatprep.subr.bf16.mxu0 %v1471_v1 }
 0x1bf   : > { %1368 = vmatpush3.bf16.msra.mxu0 %v1448_v51 }
 0x1c0   : > { %1369 = vmatprep.subr.bf16.mxu0 %v1471_v1 }
 0x1c3   : > { %1370 = vmatpush3.bf16.msra.mxu0 %v1449_v52 }
 0x1c4   : > { %1371 = vmatprep.subr.bf16.mxu0 %v1471_v1 }
 0x1c7   : > { %1372 = vmatpush3.bf16.msra.mxu0 %v1450_v53 }
 0x1c8   : > { %1373 = vmatprep.subr.bf16.mxu0 %v1471_v1 }
 0x1cb   : > { %1374 = vmatpush3.bf16.msra.mxu0 %v1451_v54 }
 0x1cc   : > { %1375 = vmatprep.subr.bf16.mxu0 %v1471_v1 }
 0x1cf   : > { %1376 = vmatpush3.bf16.msra.mxu0 %v1452_v55 }
 0x1d0   : > { %1377 = vmatprep.subr.bf16.mxu0 %v1471_v1 }
 0x1d3   : > { %1378 = vmatpush3.bf16.msra.mxu0 %v1453_v0 }
 0x1d4   : > { %1379 = vmatprep.subr.bf16.mxu0 %v1471_v1 }
 0x1d7   : > { %1380 = vmatpush3.bf16.msra.mxu0 %v1454_v2 }
 0x27a   : > { %v769_v57 = vpop.f32.mrf.mxu0 }
 0x27b   : > { %v770_v58 = vadd.f32 %v1193_v56, %v769_v57 }
 0x27c   : > { %v1343_v59 = vpop.f32.mrf.mxu0 }
 0x27d   : > { %v775_v60 = vmax.f32 %v770_v58, 0.0 }
 0x27e   : > { %v772_v61 = vpop.f32.mrf.mxu0 }
 0x27f   : > { %v776_v62 = vpack.c.bf16 %v775_v60, %v775_v60 }
 0x280   : > { %v1344_v63 = vpop.f32.mrf.mxu0 }
 0x281   : > { %1362 = vmatmul.mubr.bf16.vlgmr.msra.gmra.mxu1 %v776_v62 }
 0x282   : > { %1401 = vmatprep.mubr.msk.bf16.mxu1 %vm1472_vm0, %v1471_v1  ;;  %1386 = vmatpush3.bf16.msra.mxu1 %v1455_v3 }
 0x283   : > { %1387 = vmatprep.subr.bf16.mxu1 %v1471_v1 }
 0x286   : > { %1388 = vmatpush3.bf16.msra.mxu1 %v1456_v4 }
 0x287   : > { %1389 = vmatprep.subr.bf16.mxu1 %v1471_v1 }
 0x28a   : > { %1390 = vmatpush3.bf16.msra.mxu1 %v1457_v5 }
 0x28b   : > { %1391 = vmatprep.subr.bf16.mxu1 %v1471_v1 }
 0x28e   : > { %1392 = vmatpush3.bf16.msra.mxu1 %v1458_v6 }
 0x28f   : > { %1393 = vmatprep.subr.bf16.mxu1 %v1471_v1 }
 0x292   : > { %1394 = vmatpush3.bf16.msra.mxu1 %v1459_v7 }
 0x293   : > { %1395 = vmatprep.subr.bf16.mxu1 %v1471_v1 }
 0x296   : > { %1396 = vmatpush3.bf16.msra.mxu1 %v1460_v8 }
 0x297   : > { %1397 = vmatprep.subr.bf16.mxu1 %v1471_v1 }
 0x29a   : > { %1398 = vmatpush3.bf16.msra.mxu1 %v1461_v17 }
 0x29b   : > { %1399 = vmatprep.subr.bf16.mxu1 %v1471_v1  ;;  %v1220_v1 = vld [vmem:[%s1798_s12] ss:$0 sm:$0xff] }
 0x29e   : > { %1400 = vmatpush3.bf16.msra.mxu1 %v1462_v18 }
 0x341   : > { %v882_v10 = vpop.f32.mrf.mxu1 }
 0x342   : > { %v883_v11 = vadd.f32 %v1202_v9, %v882_v10 }
 0x343   : > { %v1363_v12 = vpop.f32.mrf.mxu1 }
 0x344   : > { %v888_v13 = vmax.f32 %v883_v11, 0.0 }
 0x345   : > { %v885_v14 = vpop.f32.mrf.mxu1 }
 0x346   : > { %v889_v15 = vpack.c.bf16 %v888_v13, %v888_v13 }
 0x347   : > { %v1364_v16 = vpop.f32.mrf.mxu1 }
 0x348   : > { %1382 = vmatmul.mubr.bf16.vlgmr.msra.gmra.mxu0 %v889_v15 }
 0x408   : > { %v995_v20 = vpop.f32.mrf.mxu0 }
 0x409   : > { %v996_v21 = vadd.f32 %v1211_v19, %v995_v20 }
 0x40a   : > { %v1383_v22 = vpop.f32.mrf.mxu0 }
 0x40b   : > { %v1001_v23 = vmax.f32 %v996_v21, 0.0 }
 0x40c   : > { %v998_v24 = vpop.f32.mrf.mxu0 }
 0x40d   : > { %v1002_v25 = vpack.c.bf16 %v1001_v23, %v1001_v23 }
 0x40e   : > { %v1384_v26 = vpop.f32.mrf.mxu0 }
 0x40f   : > { %1402 = vmatmul.mubr.bf16.vlgmr.msra.gmra.mxu1 %v1002_v25 }
 0x4cf   : > { %v1108_v27 = vpop.f32.mrf.mxu1 }
 0x4d0   : > { %v1109_v28 = vadd.f32 %v1220_v1, %v1108_v27 }
 0x4d1   : > { %v1403_v29 = vpop.f32.mrf.mxu1 }
 0x4d2   : > { %1114 = vst [vmem:[%s435_s20] sm:$0xff] %v1109_v28 }
 0x4d3   : > { %v1111_v30 = vpop.f32.mrf.mxu1 }
 0x4d5   : > { %v1404_v31 = vpop.f32.mrf.mxu1 }
 0x4d6 PF: > { %s23_s25 = sadd.s32 1, %s1469_s25  }
 0x4d7   : > { %p20_p4 = scmp.ge.s32.totalorder %s23_s25, 4  }
 0x4d9   :  { %22 = sbr.rel (!%p20_p4) target bundleno = 1 (0x1), region = 102 }

</bundles_post_ra>
